<compile_context>
chip_gen: v7x
topology: tpu7x:2x2x1
jax: 0.10.0
libtpu: 0.0.40
codegen_flags: <defaults>
</compile_context>

<pallas_src>
import functools

import jax
import jax.numpy as jnp
from jax.experimental import pallas as pl
from jax.experimental.pallas import tpu as pltpu


def _layernorm_kernel(x_ref, g_ref, b_ref, o_ref, *, eps):
    # Generic path: one logical row per physical row (lane width = features).
    # x_ref: (TILE_R, F)  g_ref/b_ref: (1, F) f32  o_ref: (TILE_R, F)
    x = x_ref[...].astype(jnp.float32)
    mean = jnp.mean(x, axis=-1, keepdims=True)           # XLU lane reduction
    xc = x - mean
    var = jnp.mean(xc * xc, axis=-1, keepdims=True)      # biased variance
    inv = jax.lax.rsqrt(var + eps)                        # EUP slot
    o_ref[...] = (xc * inv * g_ref[...] + b_ref[...]).astype(o_ref.dtype)


def _layernorm_packed_kernel(x_ref, g_ref, b_ref, avg_ref, o_ref, *, eps):
    # Lane-packed path for tiny F: `pack` logical rows per physical row
    # (lane width = pack*F = 128).  avg_ref is a (128,128) block-diagonal
    # matrix with 1/F blocks: x @ avg gives each segment's mean broadcast
    # back across that segment (single MXU vmatmul); same trick for the
    # (biased) variance of the centered values.
    x = x_ref[...].astype(jnp.float32)
    a = avg_ref[...]
    mean = jnp.dot(x, a, preferred_element_type=jnp.float32,
                   precision=jax.lax.Precision.HIGHEST)
    xc = x - mean
    var = jnp.dot(xc * xc, a, preferred_element_type=jnp.float32,
                  precision=jax.lax.Precision.HIGHEST)
    inv = jax.lax.rsqrt(var + eps)
    o_ref[...] = (xc * inv * g_ref[...] + b_ref[...]).astype(o_ref.dtype)


def _pick_tile_rows(rows, lane_width, itemsize, *,
                    target_block_bytes=2 << 20, max_rows=2048):
    """Largest row tile such that one block is ~target_block_bytes, counting
    the f32 promotion of in-kernel temporaries (hence max(itemsize, 4))."""
    bytes_per_row = lane_width * max(int(itemsize), 4)
    tr = target_block_bytes // max(bytes_per_row, 1)
    tr = max(8, min(int(tr), max_rows))
    tr = (tr // 8) * 8
    # Never allocate a block taller than the (sublane-rounded) row count.
    tr = min(tr, max(8, pl.cdiv(rows, 8) * 8))
    return tr


def layer_norm(x, gain, bias, *, eps=1e-5):
    """LayerNorm over the last dim of x. gain/bias have shape (features,)."""
    orig_shape = x.shape
    features = orig_shape[-1]
    rows = 1
    for d in orig_shape[:-1]:
        rows *= d

    # Pre-cast affine params once (not per grid step in the kernel).
    gain_f32 = gain.astype(jnp.float32)
    bias_f32 = bias.astype(jnp.float32)

    # Lane-dense packing for tiny feature dims that divide 128.
    pack = 1
    if features < 128 and 128 % features == 0 and rows % (128 // features) == 0:
        pack = 128 // features

    itemsize = jnp.dtype(x.dtype).itemsize

    if pack > 1:
        lane_width = pack * features          # == 128 -> unmasked vld/vst
        out_rows = rows // pack
        x2 = x.reshape(out_rows, lane_width)  # contiguous row-major: free
        g2 = jnp.tile(gain_f32, pack).reshape(1, lane_width)
        b2 = jnp.tile(bias_f32, pack).reshape(1, lane_width)
        avg = (jnp.kron(jnp.eye(pack, dtype=jnp.float32),
                        jnp.ones((features, features), dtype=jnp.float32))
               / float(features))
        tile_rows = _pick_tile_rows(out_rows, lane_width, itemsize)
        kernel = functools.partial(_layernorm_packed_kernel, eps=eps)
        in_specs = [
            pl.BlockSpec((tile_rows, lane_width), lambda i: (i, 0)),
            pl.BlockSpec((1, lane_width), lambda i: (0, 0)),
            pl.BlockSpec((1, lane_width), lambda i: (0, 0)),
            pl.BlockSpec((lane_width, lane_width), lambda i: (0, 0)),
        ]
        args = (x2, g2, b2, avg)
    else:
        # Generic path (any F).  For F not a multiple of 128 the tail stores
        # are masked; feature-axis padding is skipped to avoid extra HBM
        # copies for the common (multiple-of-128 or tiny-F) cases.
        lane_width = features
        out_rows = rows
        x2 = x.reshape(rows, features)
        g2 = gain_f32.reshape(1, features)
        b2 = bias_f32.reshape(1, features)
        tile_rows = _pick_tile_rows(rows, lane_width, itemsize)
        kernel = functools.partial(_layernorm_kernel, eps=eps)
        in_specs = [
            pl.BlockSpec((tile_rows, lane_width), lambda i: (i, 0)),
            pl.BlockSpec((1, lane_width), lambda i: (0, 0)),
            pl.BlockSpec((1, lane_width), lambda i: (0, 0)),
        ]
        args = (x2, g2, b2)

    # No wrapper-side padding: Pallas masks the partial last row-block.
    grid = (pl.cdiv(out_rows, tile_rows),)

    out2 = pl.pallas_call(
        kernel,
        out_shape=jax.ShapeDtypeStruct((out_rows, lane_width), x.dtype),
        grid_spec=pltpu.PrefetchScalarGridSpec(
            num_scalar_prefetch=0,
            grid=grid,
            in_specs=in_specs,
            out_specs=pl.BlockSpec((tile_rows, lane_width), lambda i: (i, 0)),
        ),
        compiler_params=pltpu.CompilerParams(
            dimension_semantics=("parallel",),      # megacore sharding on v7x
            vmem_limit_bytes=32 * 1024 * 1024,      # >> actual need, < v7x 64 MiB
        ),
    )(*args)

    return out2.reshape(orig_shape)


def _reference_layer_norm(x, gain, bias, eps=1e-5):
    xf = x.astype(jnp.float32)
    mean = jnp.mean(xf, axis=-1, keepdims=True)
    var = jnp.mean((xf - mean) ** 2, axis=-1, keepdims=True)
    y = (xf - mean) / jnp.sqrt(var + eps)
    return (y * gain + bias).astype(x.dtype)


if __name__ == "__main__":
    # Module params: features=32, deterministic init (gain = ones, bias = zeros).
    features = 32
    eps = 1e-5
    gain = jnp.ones((features,), dtype=jnp.float32)
    bias = jnp.zeros((features,), dtype=jnp.float32)

    # Example input: (batch=2, seq=8, hidden=32) -> exercises the lane-packed path.
    key = jax.random.PRNGKey(0)
    x = jax.random.normal(key, (2, 8, features), dtype=jnp.float32)

    out = jax.block_until_ready(layer_norm(x, gain, bias, eps=eps))
    ref = _reference_layer_norm(x, gain, bias, eps=eps)
    assert out.shape == x.shape and out.dtype == x.dtype
    assert jnp.allclose(out, ref, atol=1e-4, rtol=1e-5)

    # Also exercise the generic path with a partial last row-block
    # (rows = 21, not a multiple of the tile nor of the packing factor).
    x2 = jax.random.normal(jax.random.PRNGKey(1), (3, 7, features),
                           dtype=jnp.float32)
    out2 = jax.block_until_ready(layer_norm(x2, gain, bias, eps=eps))
    ref2 = _reference_layer_norm(x2, gain, bias, eps=eps)
    assert out2.shape == x2.shape
    assert jnp.allclose(out2, ref2, atol=1e-4, rtol=1e-5)

    print("KERNEL_OK")
</pallas_src>

<mosaic_0001>
module attributes {stable_mosaic.version = 11 : i64} {
  func.func @_layernorm_packed_kernel(%arg0: i32, %arg1: memref<8x128xf32, #tpu.memory_space<vmem>>, %arg2: memref<1x128xf32, #tpu.memory_space<vmem>>, %arg3: memref<1x128xf32, #tpu.memory_space<vmem>>, %arg4: memref<128x128xf32, #tpu.memory_space<vmem>>, %arg5: memref<8x128xf32, #tpu.memory_space<vmem>>) attributes {dimension_semantics = [#tpu.dimension_semantics<parallel>], iteration_bounds = array<i64: 1>, scalar_prefetch = 0 : i64, scratch_operands = 0 : i64, tpu.core_type = #tpu.core_type<tc>, window_params = [{transform_indices = @transform_0, window_bounds = array<i64: 8, 128>}, {pipeline_mode = #tpu.pipeline_mode<synchronous>, transform_indices = @transform_1, window_bounds = array<i64: 1, 128>}, {pipeline_mode = #tpu.pipeline_mode<synchronous>, transform_indices = @transform_2, window_bounds = array<i64: 1, 128>}, {pipeline_mode = #tpu.pipeline_mode<synchronous>, transform_indices = @transform_3, window_bounds = array<i64: 128, 128>}, {transform_indices = @transform_4, window_bounds = array<i64: 8, 128>}]} {
    %c0 = arith.constant 0 : index
    %c0_0 = arith.constant 0 : index
    %0 = vector.load %arg1[%c0, %c0_0] : memref<8x128xf32, #tpu.memory_space<vmem>>, vector<8x128xf32>
    %c0_1 = arith.constant 0 : index
    %c0_2 = arith.constant 0 : index
    %1 = vector.load %arg4[%c0_1, %c0_2] : memref<128x128xf32, #tpu.memory_space<vmem>>, vector<128x128xf32>
    %cst = arith.constant dense<0.000000e+00> : vector<8x128xf32>
    %2 = tpu.matmul %0, %1, %cst {dimension_numbers = #tpu.dot_dimension_numbers<[1], [0], [0], [1], [0, 0, 1, 1], [], []>, precision = #tpu.contract_precision<fp32>} : vector<8x128xf32>, vector<128x128xf32>, vector<8x128xf32> -> vector<8x128xf32>
    %3 = arith.subf %0, %2 : vector<8x128xf32>
    %4 = arith.mulf %3, %3 : vector<8x128xf32>
    %cst_3 = arith.constant dense<0.000000e+00> : vector<8x128xf32>
    %5 = tpu.matmul %4, %1, %cst_3 {dimension_numbers = #tpu.dot_dimension_numbers<[1], [0], [0], [1], [0, 0, 1, 1], [], []>, precision = #tpu.contract_precision<fp32>} : vector<8x128xf32>, vector<128x128xf32>, vector<8x128xf32> -> vector<8x128xf32>
    %cst_4 = arith.constant 9.99999974E-6 : f32
    %6 = vector.broadcast %cst_4 : f32 to vector<8x128xf32>
    %7 = arith.addf %5, %6 : vector<8x128xf32>
    %8 = math.rsqrt %7 : vector<8x128xf32>
    %9 = arith.mulf %3, %8 : vector<8x128xf32>
    %c0_5 = arith.constant 0 : index
    %c0_6 = arith.constant 0 : index
    %10 = vector.load %arg2[%c0_5, %c0_6] : memref<1x128xf32, #tpu.memory_space<vmem>>, vector<1x128xf32>
    %11 = vector.broadcast %10 : vector<1x128xf32> to vector<8x128xf32>
    %12 = arith.mulf %9, %11 : vector<8x128xf32>
    %c0_7 = arith.constant 0 : index
    %c0_8 = arith.constant 0 : index
    %13 = vector.load %arg3[%c0_7, %c0_8] : memref<1x128xf32, #tpu.memory_space<vmem>>, vector<1x128xf32>
    %14 = vector.broadcast %13 : vector<1x128xf32> to vector<8x128xf32>
    %15 = arith.addf %12, %14 : vector<8x128xf32>
    %c0_9 = arith.constant 0 : index
    %c0_10 = arith.constant 0 : index
    %16 = vector.load %arg5[%c0_9, %c0_10] : memref<8x128xf32, #tpu.memory_space<vmem>>, vector<8x128xf32>
    tpu.vector_store %arg5[%c0_9, %c0_10], %15 {strides = array<i32>} : memref<8x128xf32, #tpu.memory_space<vmem>>, vector<8x128xf32>,
    return
  }
  func.func @transform_0(%arg0: i32) -> (i32, i32) {
    %c0_i32 = arith.constant 0 : i32
    %c0_i32_0 = arith.constant 0 : i32
    return %arg0, %c0_i32 : i32, i32
  }
  func.func @transform_1(%arg0: i32) -> (i32, i32) {
    %c0_i32 = arith.constant 0 : i32
    %c0_i32_0 = arith.constant 0 : i32
    %c0_i32_1 = arith.constant 0 : i32
    return %c0_i32, %c0_i32_0 : i32, i32
  }
  func.func @transform_2(%arg0: i32) -> (i32, i32) {
    %c0_i32 = arith.constant 0 : i32
    %c0_i32_0 = arith.constant 0 : i32
    %c0_i32_1 = arith.constant 0 : i32
    return %c0_i32, %c0_i32_0 : i32, i32
  }
  func.func @transform_3(%arg0: i32) -> (i32, i32) {
    %c0_i32 = arith.constant 0 : i32
    %c0_i32_0 = arith.constant 0 : i32
    %c0_i32_1 = arith.constant 0 : i32
    return %c0_i32, %c0_i32_0 : i32, i32
  }
  func.func @transform_4(%arg0: i32) -> (i32, i32) {
    %c0_i32 = arith.constant 0 : i32
    %c0_i32_0 = arith.constant 0 : i32
    return %arg0, %c0_i32 : i32, i32
  }
}

</mosaic_0001>

<bundles_post_ra>
// kernel: tpu_custom_call.1
= control target key start
LH: loop header
LB: loop body
LE: loop exit
PB: predicated region body
PF: predicated region fallthrough
CT: control target
= control target key end

     0   :  { %9 = vsyncpa [#allocation3], 0  ;;  %s2877_s0 = inlined_call_operand.hbm [shape: f32[4,128], index: 0, kind: input, shape index: {}]   ;;  %s2878_s1 = inlined_call_operand.vmem [shape: f32[1,128], index: 1, kind: input, shape index: {}]   ;;  %s2879_s2 = inlined_call_operand.vmem [shape: f32[1,128], index: 2, kind: input, shape index: {}]   ;;  %s2880_s3 = inlined_call_operand.hbm [shape: f32[128,128], index: 3, kind: input, shape index: {}]   ;;  %s2881_s4 = inlined_call_operand.hbm [shape: f32[4,128], index: 4, kind: output, shape index: {}]  }
   0x1   :  { %10 = vsyncpa [#allocation6], 0 }
   0x2   :  { %11 = vsyncpa [#allocation4], 0 }
   0x3   :  { %16 = vsyncadd [#allocation3], 64  ;;  %s2403_s15 = smov [#allocation2]   ;;  %s2331_s19 = scalar_lea.hbm %s2877_s0, 64 }
   0x4   :  { %s17_s16 = sshll.u32 %s2403_s15, 4  ;;  %p2332_p0 = scmp.ne.s32.totalorder %s2877_s0, %s2331_s19  ;;  %s18_s16 = int_to_ptr.vmem [resolvable:$true] %s17_s16 }
   0x5   :  { %p2335_p1 = scmp.lt.u32.totalorder %s2331_s19, %s2877_s0 }
   0x7   :  { %p2337_p2 = pnand %p2335_p1, %p2332_p0 }
   0x9   :  { %2340 = shalt.err (!%p2337_p2)
}
   0xa   :  { %s2341_s24 = scalar_lea.vmem %s18_s16, 64  ;;  %s2345_s25 = scalar_lea.vmem %s18_s16, 128 }
   0xb   :  { %p2342_p3 = scmp.ne.s32.totalorder %s18_s16, %s2341_s24  ;;  %p2346_p4 = scmp.lt.s32.totalorder %s18_s16, %s18_s16 }
   0xc   :  { %p2347_p5 = scmp.lt.s32.totalorder %s2345_s25, %s2341_s24 }
   0xe   :  { %p2348_p6 = por %p2347_p5, %p2346_p4 }
  0x10   :  { %p2349_p7 = pnand %p2348_p6, %p2342_p3 }
  0x12   :  { %2352 = shalt.err (!%p2349_p7)
}
  0x13   :  { %s2404_s26 = smov 64   ;;  %s2405_s27 = smov 4  }
  0x14   :  { %23 = dma.hbm_to_vmem [thread:$0]  %s2877_s0, 64, %s18_s16, [#allocation3], %s2404_s26, %s2404_s26, %s2405_s27  }
  0x15   :  { %s2406_s30 = smov [#allocation5]   ;;  %s2353_s8 = scalar_lea.hbm %s2880_s3, 2048 }
  0x16   :  { %s33_s5 = sshll.u32 %s2406_s30, 4  ;;  %p2354_p8 = scmp.ne.s32.totalorder %s2880_s3, %s2353_s8  ;;  %s34_s5 = int_to_ptr.vmem [resolvable:$true] %s33_s5 }
  0x17   :  { %p2357_p9 = scmp.lt.u32.totalorder %s2353_s8, %s2880_s3 }
  0x19   :  { %p2359_p10 = pnand %p2357_p9, %p2354_p8 }
  0x1b   :  { %2362 = shalt.err (!%p2359_p10)
}
  0x1c   :  { %s2363_s13 = scalar_lea.vmem %s34_s5, 2048  ;;  %p2368_p12 = scmp.lt.s32.totalorder %s34_s5, %s34_s5 }
  0x1d   :  { %p2364_p11 = scmp.ne.s32.totalorder %s34_s5, %s2363_s13  ;;  %p2369_p13 = scmp.lt.s32.totalorder %s2363_s13, %s2363_s13 }
  0x1f   :  { %p2370_p0 = por %p2369_p13, %p2368_p12 }
  0x21   :  { %p2371_p1 = pnand %p2370_p0, %p2364_p11 }
  0x23   :  { %2374 = shalt.err (!%p2371_p1)
}
  0x24   :  { %s2407_s0 = smov 128   ;;  %s2408_s14 = smov 8  }
  0x25   :  { %39 = dma.hbm_to_vmem [thread:$0]  %s2880_s3, 2048, %s34_s5, [#allocation6], %s2407_s0, %s2407_s0, %s2408_s14  }
  0x26   :  { %2397 = dma.done.wait [#allocation3], 128  }
  0x27   :  { %2398 = vsyncadd [#allocation3], 4294967168 }
  0x28   :  { %2399 = dma.done.wait [#allocation6], 2048  }
  0x29   :  { %2400 = vsyncadd [#allocation6], 4294965248  ;;  %v2409_v0 = vmov 0.0|0.0   ;;  %vm2410_vm0 = vmmov 0   ;;  %v2411_v1 = vmov 0.0   ;;  %v47_v2 = vld [vmem:[#allocation5] sm:$0xff] }
  0x2a   :  { %2010 = vmatprep.subr.bf16.mxu0 %v2409_v0  ;;  %1622 = vmatprep.mubr.msk.f32.mxu0 %vm2410_vm0, %v2411_v1  ;;  %v48_v3 = vld [vmem:[#allocation5 + $0x8] sm:$0xff]  ;;  %v49_v4 = vld [vmem:[#allocation5 + $0x10] sm:$0xff]  ;;  %v64_v5 = vand.u32 4294901760, %v47_v2  ;;  %v50_v7 = vld [vmem:[#allocation5 + $0x18] sm:$0xff] }
  0x2b   :  { %2154 = vmatprep.subr.bf16.mxu1 %v2409_v0  ;;  %1832 = vmatprep.mubr.msk.f32.mxu1 %vm2410_vm0, %v2411_v1  ;;  %v67_v6 = vand.u32 4294901760, %v48_v3  ;;  %v70_v8 = vand.u32 4294901760, %v49_v4  ;;  %v73_v9 = vand.u32 4294901760, %v50_v7  ;;  %v51_v10 = vld [vmem:[#allocation5 + $0x20] sm:$0xff]  ;;  %v52_v11 = vld [vmem:[#allocation5 + $0x28] sm:$0xff]  ;;  %v53_v16 = vld [vmem:[#allocation5 + $0x30] sm:$0xff] }
  0x2c   :  { %v76_v14 = vand.u32 4294901760, %v51_v10  ;;  %v79_v15 = vand.u32 4294901760, %v52_v11  ;;  %v54_v17 = vld [vmem:[#allocation5 + $0x38] sm:$0xff]  ;;  %v82_v19 = vand.u32 4294901760, %v53_v16  ;;  %v55_v21 = vld [vmem:[#allocation5 + $0x40] sm:$0xff]  ;;  %v56_v23 = vld [vmem:[#allocation5 + $0x48] sm:$0xff]  ;;  %v2493_v34 = vsub.f32 %v47_v2, %v64_v5 }
  0x2d   :  { %v2471_v12 = vpack.c.bf16 %v67_v6, %v64_v5  ;;  %v2474_v13 = vpack.c.bf16 %v73_v9, %v70_v8  ;;  %v85_v20 = vand.u32 4294901760, %v54_v17  ;;  %v2482_v22 = vld [vmem:[#allocation2] sm:$0xff]  ;;  %v57_v24 = vld [vmem:[#allocation5 + $0x50] sm:$0xff]  ;;  %v59_v26 = vld [vmem:[#allocation5 + $0x60] sm:$0xff]  ;;  %v88_v27 = vand.u32 4294901760, %v55_v21 }
  0x2e   :  { %v2480_v18 = vpack.c.bf16 %v79_v15, %v76_v14  ;;  %v58_v25 = vld [vmem:[#allocation5 + $0x58] sm:$0xff]  ;;  %v60_v28 = vld [vmem:[#allocation5 + $0x68] sm:$0xff]  ;;  %v61_v29 = vld [vmem:[#allocation5 + $0x70] sm:$0xff]  ;;  %v2488_v31 = vand.u32 4294901760, %v2482_v22  ;;  %v91_v33 = vand.u32 4294901760, %v56_v23  ;;  %v2495_v35 = vsub.f32 %v48_v3, %v67_v6 }
  0x2f   :  { %2012 = vmatpush3.bf16.msra.mxu0 %v2471_v12  ;;  %2156 = vmatpush3.bf16.msra.mxu1 %v2471_v12  ;;  %v62_v30 = vld [vmem:[#allocation5 + $0x78] sm:$0xff]  ;;  %v2491_v32 = vpack.c.bf16 %v85_v20, %v82_v19  ;;  %v94_v36 = vand.u32 4294901760, %v57_v24  ;;  %v97_v37 = vand.u32 4294901760, %v58_v25  ;;  %v100_v38 = vand.u32 4294901760, %v59_v26 }
  0x30   :  { %2013 = vmatprep.subr.bf16.mxu0 %v2409_v0  ;;  %2157 = vmatprep.subr.bf16.mxu1 %v2409_v0  ;;  %v103_v39 = vand.u32 4294901760, %v60_v28  ;;  %v106_v40 = vand.u32 4294901760, %v61_v29  ;;  %v109_v41 = vand.u32 4294901760, %v62_v30  ;;  %v2502_v42 = vsub.f32 %v2482_v22, %v2488_v31 }
  0x31   :  { %v2504_v43 = vsub.f32 %v49_v4, %v70_v8  ;;  %v2507_v44 = vpack.c.bf16 %v91_v33, %v88_v27  ;;  %v157_v45 = vand.u32 4294901760, %v2493_v34  ;;  %v164_v46 = vand.u32 4294901760, %v2495_v35 }
  0x32   :  { %v2511_v47 = vsub.f32 %v50_v7, %v73_v9  ;;  %v2515_v48 = vsub.f32 %v51_v10, %v76_v14  ;;  %v2518_v49 = vpack.c.bf16 %v97_v37, %v94_v36  ;;  %v2520_v50 = vpack.c.bf16 %v103_v39, %v100_v38 }
  0x33   :  { %2015 = vmatpush3.bf16.msra.mxu0 %v2474_v13  ;;  %2159 = vmatpush3.bf16.msra.mxu1 %v2474_v13  ;;  %v2522_v51 = vpack.c.bf16 %v109_v41, %v106_v40  ;;  %v146_v52 = vand.u32 4294901760, %v2502_v42  ;;  %v171_v53 = vand.u32 4294901760, %v2504_v43  ;;  %v2526_v54 = vsub.f32 %v52_v11, %v79_v15 }
  0x34   :  { %2016 = vmatprep.subr.bf16.mxu0 %v2409_v0  ;;  %2160 = vmatprep.subr.bf16.mxu1 %v2409_v0  ;;  %v2528_v55 = vsub.f32 %v53_v16, %v82_v19  ;;  %v158_v56 = vsub.f32 %v2493_v34, %v157_v45  ;;  %v165_v57 = vsub.f32 %v2495_v35, %v164_v46  ;;  %v178_v58 = vand.u32 4294901760, %v2511_v47 }
  0x35   :  { %v2534_v59 = vsub.f32 %v54_v17, %v85_v20  ;;  %v185_v60 = vand.u32 4294901760, %v2515_v48  ;;  %v2539_v61 = vsub.f32 %v55_v21, %v88_v27  ;;  %v2541_v62 = vsub.f32 %v56_v23, %v91_v33 }
  0x36   :  { %v2543_v63 = vsub.f32 %v57_v24, %v94_v36  ;;  %v2546_v2 = vsub.f32 %v58_v25, %v97_v37  ;;  %v2548_v3 = vsub.f32 %v59_v26, %v100_v38  ;;  %v2550_v4 = vsub.f32 %v60_v28, %v103_v39 }
  0x37   :  { %2018 = vmatpush3.bf16.msra.mxu0 %v2480_v18  ;;  %2162 = vmatpush3.bf16.msra.mxu1 %v2480_v18  ;;  %v2552_v5 = vsub.f32 %v61_v29, %v106_v40  ;;  %v147_v6 = vsub.f32 %v2502_v42, %v146_v52  ;;  %v172_v7 = vsub.f32 %v2504_v43, %v171_v53  ;;  %v192_v8 = vand.u32 4294901760, %v2526_v54 }
  0x38   :  { %2019 = vmatprep.subr.bf16.mxu0 %v2409_v0  ;;  %2163 = vmatprep.subr.bf16.mxu1 %v2409_v0  ;;  %v2559_v9 = vsub.f32 %v62_v30, %v109_v41  ;;  %v159_v10 = vand.u32 4294901760, %v158_v56  ;;  %v166_v11 = vand.u32 4294901760, %v165_v57  ;;  %v179_v14 = vsub.f32 %v2511_v47, %v178_v58 }
  0x39   :  { %v199_v15 = vand.u32 4294901760, %v2528_v55  ;;  %v206_v16 = vand.u32 4294901760, %v2534_v59  ;;  %v213_v17 = vand.u32 4294901760, %v2539_v61  ;;  %v220_v19 = vand.u32 4294901760, %v2541_v62 }
  0x3a   :  { %v227_v20 = vand.u32 4294901760, %v2543_v63  ;;  %v234_v21 = vand.u32 4294901760, %v2546_v2  ;;  %v241_v23 = vand.u32 4294901760, %v2548_v3  ;;  %v248_v24 = vand.u32 4294901760, %v2550_v4 }
  0x3b   :  { %2021 = vmatpush3.bf16.msra.mxu0 %v2491_v32  ;;  %2165 = vmatpush3.bf16.msra.mxu1 %v2491_v32  ;;  %v255_v25 = vand.u32 4294901760, %v2552_v5  ;;  %v262_v26 = vand.u32 4294901760, %v2559_v9  ;;  %v2576_v27 = vpack.c.bf16 %v164_v46, %v157_v45  ;;  %v2578_v28 = vpack.c.bf16 %v178_v58, %v171_v53 }
  0x3c   :  { %2022 = vmatprep.subr.bf16.mxu0 %v2409_v0  ;;  %2166 = vmatprep.subr.bf16.mxu1 %v2409_v0  ;;  %v2580_v29 = vpack.c.bf16 %v192_v8, %v185_v60  ;;  %v2583_v30 = vpack.c.bf16 %v206_v16, %v199_v15  ;;  %v2585_v33 = vpack.c.bf16 %v220_v19, %v213_v17  ;;  %v148_v39 = vand.u32 4294901760, %v147_v6 }
  0x3d   :  { %v2587_v36 = vpack.c.bf16 %v234_v21, %v227_v20  ;;  %v2589_v37 = vpack.c.bf16 %v248_v24, %v241_v23  ;;  %v2592_v38 = vpack.c.bf16 %v262_v26, %v255_v25  ;;  %v186_v40 = vsub.f32 %v2515_v48, %v185_v60 }
  0x3e   :  { %v2598_v41 = vpack.c.bf16 %v166_v11, %v159_v10  ;;  %v173_v45 = vand.u32 4294901760, %v172_v7  ;;  %v180_v46 = vand.u32 4294901760, %v179_v14  ;;  %v193_v53 = vsub.f32 %v2526_v54, %v192_v8 }
  0x3f   :  { %2024 = vmatpush3.bf16.msra.mxu0 %v2507_v44  ;;  %2168 = vmatpush3.bf16.msra.mxu1 %v2507_v44  ;;  %v200_v56 = vsub.f32 %v2528_v55, %v199_v15  ;;  %v187_v58 = vand.u32 4294901760, %v186_v40  ;;  %v207_v6 = vsub.f32 %v2534_v59, %v206_v16  ;;  %v214_v11 = vsub.f32 %v2539_v61, %v213_v17 }
  0x40   :  { %2025 = vmatprep.subr.bf16.mxu0 %v2409_v0  ;;  %2169 = vmatprep.subr.bf16.mxu1 %v2409_v0  ;;  %v2606_v57 = vpack.c.bf16 %v180_v46, %v173_v45  ;;  %v194_v60 = vand.u32 4294901760, %v193_v53  ;;  %v221_v14 = vsub.f32 %v2541_v62, %v220_v19  ;;  %v228_v15 = vsub.f32 %v2543_v63, %v227_v20 }
  0x41   :  { %v201_v7 = vand.u32 4294901760, %v200_v56  ;;  %v208_v10 = vand.u32 4294901760, %v207_v6  ;;  %v235_v45 = vsub.f32 %v2546_v2, %v234_v21  ;;  %v242_v46 = vsub.f32 %v2548_v3, %v241_v23 }
  0x42   :  { %v2613_v8 = vpack.c.bf16 %v194_v60, %v187_v58  ;;  %v222_v40 = vand.u32 4294901760, %v221_v14  ;;  %v229_v19 = vand.u32 4294901760, %v228_v15  ;;  %v249_v20 = vsub.f32 %v2550_v4, %v248_v24 }
  0x43   :  { %2027 = vmatpush3.bf16.msra.mxu0 %v2518_v49  ;;  %2171 = vmatpush3.bf16.msra.mxu1 %v2518_v49  ;;  %v2620_v16 = vpack.c.bf16 %v208_v10, %v201_v7  ;;  %v236_v53 = vand.u32 4294901760, %v235_v45  ;;  %v256_v56 = vsub.f32 %v2552_v5, %v255_v25  ;;  %v243_v21 = vand.u32 4294901760, %v242_v46 }
  0x44   :  { %2028 = vmatprep.subr.bf16.mxu0 %v2409_v0  ;;  %2172 = vmatprep.subr.bf16.mxu1 %v2409_v0  ;;  %v250_v60 = vand.u32 4294901760, %v249_v20  ;;  %v263_v23 = vsub.f32 %v2559_v9, %v262_v26  ;;  %v2647_v26 = vpack.c.bf16 %v2495_v35, %v2493_v34  ;;  %v2654_v10 = vpack.c.bf16 %v2511_v47, %v2504_v43 }
  0x45   :  { %v2632_v58 = vpack.c.bf16 %v236_v53, %v229_v19  ;;  %v257_v7 = vand.u32 4294901760, %v256_v56  ;;  %v2662_v34 = vpack.c.bf16 %v2526_v54, %v2515_v48  ;;  %v2668_v35 = vpack.c.bf16 %v2534_v59, %v2528_v55 }
  0x46   :  { %v2637_v6 = vpack.c.bf16 %v250_v60, %v243_v21  ;;  %v264_v24 = vand.u32 4294901760, %v263_v23  ;;  %v2674_v43 = vpack.c.bf16 %v2541_v62, %v2539_v61  ;;  %v2680_v47 = vpack.c.bf16 %v2546_v2, %v2543_v63 }
  0x47   :  { %2030 = vmatpush3.bf16.msra.mxu0 %v2520_v50  ;;  %2174 = vmatpush3.bf16.msra.mxu1 %v2520_v50  ;;  %v2686_v48 = vpack.c.bf16 %v2550_v4, %v2548_v3  ;;  %v2692_v54 = vpack.c.bf16 %v2559_v9, %v2552_v5 }
  0x48   :  { %2031 = vmatprep.subr.bf16.mxu0 %v2409_v0  ;;  %2175 = vmatprep.subr.bf16.mxu1 %v2409_v0  ;;  %v2641_v25 = vpack.c.bf16 %v264_v24, %v257_v7 }
  0x4b   :  { %2033 = vmatpush3.bf16.msra.mxu0 %v2522_v51  ;;  %2177 = vmatpush3.bf16.msra.mxu1 %v2522_v51 }
  0x4c   :  { %2034 = vmatprep.subr.bf16.mxu0 %v2409_v0  ;;  %2178 = vmatprep.subr.bf16.mxu1 %v2409_v0 }
  0x4e   :  { %1623 = vmatmul.mubr.f32.vlgmr.msra.gmra.mrb[0].mxu0 %v148_v39  ;;  %v215_v39 = vand.u32 4294901760, %v214_v11 }
  0x4f   :  { %2036 = vmatpush3.bf16.msra.mxu0 %v2598_v41  ;;  %1657 = vmatprep.mubr.msk.f32.mxu0 %vm2410_vm0, %v2411_v1 }
  0x50   :  { %2037 = vmatprep.subr.bf16.mxu0 %v2409_v0  ;;  %v2626_v17 = vpack.c.bf16 %v222_v40, %v215_v39 }
  0x53   :  { %2039 = vmatpush3.bf16.msra.mxu0 %v2606_v57 }
  0x54   :  { %2040 = vmatprep.subr.bf16.mxu0 %v2409_v0 }
  0x57   :  { %2042 = vmatpush3.bf16.msra.mxu0 %v2613_v8 }
  0x58   :  { %2043 = vmatprep.subr.bf16.mxu0 %v2409_v0 }
  0x5b   :  { %2045 = vmatpush3.bf16.msra.mxu0 %v2620_v16 }
  0x5c   :  { %2046 = vmatprep.subr.bf16.mxu0 %v2409_v0 }
  0x5f   :  { %2048 = vmatpush3.bf16.msra.mxu0 %v2626_v17 }
  0x60   :  { %2049 = vmatprep.subr.bf16.mxu0 %v2409_v0 }
  0x63   :  { %2051 = vmatpush3.bf16.msra.mxu0 %v2632_v58 }
  0x64   :  { %2052 = vmatprep.subr.bf16.mxu0 %v2409_v0 }
  0x67   :  { %2054 = vmatpush3.bf16.msra.mxu0 %v2637_v6 }
  0x68   :  { %2055 = vmatprep.subr.bf16.mxu0 %v2409_v0 }
  0x6b   :  { %2057 = vmatpush3.bf16.msra.mxu0 %v2641_v25 }
  0x6c   :  { %2058 = vmatprep.subr.bf16.mxu0 %v2409_v0 }
  0x6e   :  { %1658 = vmatmul.mubr.f32.vlgmr.msra.gmra.mrb[0].mxu0 %v2488_v31 }
  0x6f   :  { %2060 = vmatpush3.bf16.msra.mxu0 %v2647_v26  ;;  %1692 = vmatprep.mubr.msk.f32.mxu0 %vm2410_vm0, %v2411_v1 }
  0x70   :  { %2061 = vmatprep.subr.bf16.mxu0 %v2409_v0 }
  0x73   :  { %2063 = vmatpush3.bf16.msra.mxu0 %v2654_v10 }
  0x74   :  { %2064 = vmatprep.subr.bf16.mxu0 %v2409_v0 }
  0x77   :  { %2066 = vmatpush3.bf16.msra.mxu0 %v2662_v34 }
  0x78   :  { %2067 = vmatprep.subr.bf16.mxu0 %v2409_v0 }
  0x7b   :  { %2069 = vmatpush3.bf16.msra.mxu0 %v2668_v35 }
  0x7c   :  { %2070 = vmatprep.subr.bf16.mxu0 %v2409_v0 }
  0x7f   :  { %2072 = vmatpush3.bf16.msra.mxu0 %v2674_v43 }
  0x80   :  { %2073 = vmatprep.subr.bf16.mxu0 %v2409_v0 }
  0x83   :  { %2075 = vmatpush3.bf16.msra.mxu0 %v2680_v47 }
  0x84   :  { %2076 = vmatprep.subr.bf16.mxu0 %v2409_v0 }
  0x87   :  { %2078 = vmatpush3.bf16.msra.mxu0 %v2686_v48 }
  0x88   :  { %2079 = vmatprep.subr.bf16.mxu0 %v2409_v0 }
  0x8b   :  { %2081 = vmatpush3.bf16.msra.mxu0 %v2692_v54 }
  0x8c   :  { %2082 = vmatprep.subr.bf16.mxu0 %v2409_v0 }
  0x8e   :  { %1693 = vmatmul.mubr.f32.vlgmr.msra.gmra.mrb[0].mxu0 %v2502_v42 }
  0x8f   :  { %2084 = vmatpush3.bf16.msra.mxu0 %v2471_v12  ;;  %1727 = vmatprep.mubr.msk.f32.mxu0 %vm2410_vm0, %v2411_v1 }
  0x90   :  { %2085 = vmatprep.subr.bf16.mxu0 %v2409_v0 }
  0x93   :  { %2087 = vmatpush3.bf16.msra.mxu0 %v2474_v13 }
  0x94   :  { %2088 = vmatprep.subr.bf16.mxu0 %v2409_v0 }
  0x97   :  { %2090 = vmatpush3.bf16.msra.mxu0 %v2480_v18 }
  0x98   :  { %2091 = vmatprep.subr.bf16.mxu0 %v2409_v0 }
  0x9b   :  { %2093 = vmatpush3.bf16.msra.mxu0 %v2491_v32 }
  0x9c   :  { %2094 = vmatprep.subr.bf16.mxu0 %v2409_v0 }
  0x9f   :  { %2096 = vmatpush3.bf16.msra.mxu0 %v2507_v44 }
  0xa0   :  { %2097 = vmatprep.subr.bf16.mxu0 %v2409_v0 }
  0xa3   :  { %2099 = vmatpush3.bf16.msra.mxu0 %v2518_v49 }
  0xa4   :  { %2100 = vmatprep.subr.bf16.mxu0 %v2409_v0 }
  0xa7   :  { %2102 = vmatpush3.bf16.msra.mxu0 %v2520_v50 }
  0xa8   :  { %2103 = vmatprep.subr.bf16.mxu0 %v2409_v0 }
  0xab   :  { %2105 = vmatpush3.bf16.msra.mxu0 %v2522_v51 }
  0xac   :  { %2106 = vmatprep.subr.bf16.mxu0 %v2409_v0 }
  0xae   :  { %1728 = vmatmul.mubr.f32.vlgmr.msra.gmra.mrb[0].mxu0 %v146_v52 }
  0xaf   :  { %2108 = vmatpush3.bf16.msra.mxu0 %v2576_v27  ;;  %1762 = vmatprep.mubr.msk.f32.mxu0 %vm2410_vm0, %v2411_v1 }
  0xb0   :  { %2109 = vmatprep.subr.bf16.mxu0 %v2409_v0 }
  0xb3   :  { %2111 = vmatpush3.bf16.msra.mxu0 %v2578_v28 }
  0xb4   :  { %2112 = vmatprep.subr.bf16.mxu0 %v2409_v0 }
  0xb7   :  { %2114 = vmatpush3.bf16.msra.mxu0 %v2580_v29 }
  0xb8   :  { %2115 = vmatprep.subr.bf16.mxu0 %v2409_v0 }
  0xbb   :  { %2117 = vmatpush3.bf16.msra.mxu0 %v2583_v30 }
  0xbc   :  { %2118 = vmatprep.subr.bf16.mxu0 %v2409_v0 }
  0xbf   :  { %2120 = vmatpush3.bf16.msra.mxu0 %v2585_v33 }
  0xc0   :  { %2121 = vmatprep.subr.bf16.mxu0 %v2409_v0 }
  0xc3   :  { %2123 = vmatpush3.bf16.msra.mxu0 %v2587_v36 }
  0xc4   :  { %2124 = vmatprep.subr.bf16.mxu0 %v2409_v0 }
  0xc7   :  { %2126 = vmatpush3.bf16.msra.mxu0 %v2589_v37 }
  0xc8   :  { %2127 = vmatprep.subr.bf16.mxu0 %v2409_v0 }
  0xcb   :  { %2129 = vmatpush3.bf16.msra.mxu0 %v2592_v38 }
  0xcc   :  { %2130 = vmatprep.subr.bf16.mxu0 %v2409_v0 }
  0xce   :  { %1763 = vmatmul.mubr.f32.vlgmr.msra.gmra.mrb[0].mxu0 %v2488_v31 }
  0xcf   :  { %2132 = vmatpush3.bf16.msra.mxu0 %v2471_v12  ;;  %1797 = vmatprep.mubr.msk.f32.mxu0 %vm2410_vm0, %v2411_v1 }
  0xd0   :  { %2133 = vmatprep.subr.bf16.mxu0 %v2409_v0 }
  0xd3   :  { %2135 = vmatpush3.bf16.msra.mxu0 %v2474_v13 }
  0xd4   :  { %2136 = vmatprep.subr.bf16.mxu0 %v2409_v0 }
  0xd7   :  { %2138 = vmatpush3.bf16.msra.mxu0 %v2480_v18 }
  0xd8   :  { %2139 = vmatprep.subr.bf16.mxu0 %v2409_v0 }
  0xdb   :  { %2141 = vmatpush3.bf16.msra.mxu0 %v2491_v32 }
  0xdc   :  { %2142 = vmatprep.subr.bf16.mxu0 %v2409_v0 }
  0xdf   :  { %2144 = vmatpush3.bf16.msra.mxu0 %v2507_v44 }
  0xe0   :  { %2145 = vmatprep.subr.bf16.mxu0 %v2409_v0 }
  0xe3   :  { %2147 = vmatpush3.bf16.msra.mxu0 %v2518_v49 }
  0xe4   :  { %2148 = vmatprep.subr.bf16.mxu0 %v2409_v0 }
  0xe7   :  { %2150 = vmatpush3.bf16.msra.mxu0 %v2520_v50 }
  0xe8   :  { %2151 = vmatprep.subr.bf16.mxu0 %v2409_v0 }
  0xeb   :  { %2153 = vmatpush3.bf16.msra.mxu0 %v2522_v51 }
  0xee   :  { %1798 = vmatmul.mubr.f32.vlgmr.msra.gmra.mrb[0].mxu0 %v2488_v31 }
 0x1c1   :  { %v700_v42 = vpop.f32.mrb[0].mxu0 }
 0x1c2   :  { %v2756_v52 = vsub.f32 %v2482_v22, %v700_v42  ;;  %v1799_v55 = vpop.f32.mrb[1].mxu0  ;;  %v1384_v22 = vld [vmem:[%s2878_s1] ss:$0 sm:$0xff] }
 0x1c4   :  { %v705_v59 = vmul.f32 %v2756_v52, %v2756_v52 }
 0x1c6   :  { %v2760_v61 = vand.u32 4294901760, %v705_v59 }
 0x1c8   :  { %v788_v62 = vsub.f32 %v705_v59, %v2760_v61 }
 0x1ca   :  { %v789_v63 = vand.u32 4294901760, %v788_v62 }
 0x1cc   :  { %v790_v2 = vsub.f32 %v788_v62, %v789_v63 }
 0x1ce   :  { %v791_v3 = vand.u32 4294901760, %v790_v2 }
 0x1d0   :  { %1833 = vmatmul.mubr.f32.vlgmr.msra.gmra.mrb[0].mxu1 %v791_v3 }
 0x1d1   :  { %2180 = vmatpush3.bf16.msra.mxu1 %v2598_v41  ;;  %1867 = vmatprep.mubr.msk.f32.mxu1 %vm2410_vm0, %v2411_v1 }
 0x1d2   :  { %2181 = vmatprep.subr.bf16.mxu1 %v2409_v0 }
 0x1d5   :  { %2183 = vmatpush3.bf16.msra.mxu1 %v2606_v57 }
 0x1d6   :  { %2184 = vmatprep.subr.bf16.mxu1 %v2409_v0 }
 0x1d9   :  { %2186 = vmatpush3.bf16.msra.mxu1 %v2613_v8 }
 0x1da   :  { %2187 = vmatprep.subr.bf16.mxu1 %v2409_v0 }
 0x1dd   :  { %2189 = vmatpush3.bf16.msra.mxu1 %v2620_v16 }
 0x1de   :  { %2190 = vmatprep.subr.bf16.mxu1 %v2409_v0 }
 0x1e1   :  { %2192 = vmatpush3.bf16.msra.mxu1 %v2626_v17 }
 0x1e2   :  { %2193 = vmatprep.subr.bf16.mxu1 %v2409_v0 }
 0x1e5   :  { %2195 = vmatpush3.bf16.msra.mxu1 %v2632_v58 }
 0x1e6   :  { %2196 = vmatprep.subr.bf16.mxu1 %v2409_v0 }
 0x1e9   :  { %2198 = vmatpush3.bf16.msra.mxu1 %v2637_v6 }
 0x1ea   :  { %2199 = vmatprep.subr.bf16.mxu1 %v2409_v0 }
 0x1ed   :  { %2201 = vmatpush3.bf16.msra.mxu1 %v2641_v25 }
 0x1ee   :  { %2202 = vmatprep.subr.bf16.mxu1 %v2409_v0 }
 0x1f0   :  { %1868 = vmatmul.mubr.f32.vlgmr.msra.gmra.mrb[0].mxu1 %v2760_v61 }
 0x1f1   :  { %2204 = vmatpush3.bf16.msra.mxu1 %v2647_v26  ;;  %1902 = vmatprep.mubr.msk.f32.mxu1 %vm2410_vm0, %v2411_v1 }
 0x1f2   :  { %2205 = vmatprep.subr.bf16.mxu1 %v2409_v0 }
 0x1f5   :  { %2207 = vmatpush3.bf16.msra.mxu1 %v2654_v10 }
 0x1f6   :  { %2208 = vmatprep.subr.bf16.mxu1 %v2409_v0 }
 0x1f9   :  { %2210 = vmatpush3.bf16.msra.mxu1 %v2662_v34 }
 0x1fa   :  { %2211 = vmatprep.subr.bf16.mxu1 %v2409_v0 }
 0x1fd   :  { %2213 = vmatpush3.bf16.msra.mxu1 %v2668_v35 }
 0x1fe   :  { %2214 = vmatprep.subr.bf16.mxu1 %v2409_v0 }
 0x201   :  { %2216 = vmatpush3.bf16.msra.mxu1 %v2674_v43 }
 0x202   :  { %2217 = vmatprep.subr.bf16.mxu1 %v2409_v0 }
 0x205   :  { %2219 = vmatpush3.bf16.msra.mxu1 %v2680_v47 }
 0x206   :  { %2220 = vmatprep.subr.bf16.mxu1 %v2409_v0 }
 0x209   :  { %2222 = vmatpush3.bf16.msra.mxu1 %v2686_v48 }
 0x20a   :  { %2223 = vmatprep.subr.bf16.mxu1 %v2409_v0 }
 0x20d   :  { %2225 = vmatpush3.bf16.msra.mxu1 %v2692_v54 }
 0x20e   :  { %2226 = vmatprep.subr.bf16.mxu1 %v2409_v0 }
 0x210   :  { %1903 = vmatmul.mubr.f32.vlgmr.msra.gmra.mrb[0].mxu1 %v788_v62 }
 0x211   :  { %2228 = vmatpush3.bf16.msra.mxu1 %v2471_v12  ;;  %1937 = vmatprep.mubr.msk.f32.mxu1 %vm2410_vm0, %v2411_v1 }
 0x212   :  { %2229 = vmatprep.subr.bf16.mxu1 %v2409_v0 }
 0x215   :  { %2231 = vmatpush3.bf16.msra.mxu1 %v2474_v13 }
 0x216   :  { %2232 = vmatprep.subr.bf16.mxu1 %v2409_v0 }
 0x219   :  { %2234 = vmatpush3.bf16.msra.mxu1 %v2480_v18 }
 0x21a   :  { %2235 = vmatprep.subr.bf16.mxu1 %v2409_v0 }
 0x21d   :  { %2237 = vmatpush3.bf16.msra.mxu1 %v2491_v32 }
 0x21e   :  { %2238 = vmatprep.subr.bf16.mxu1 %v2409_v0 }
 0x221   :  { %2240 = vmatpush3.bf16.msra.mxu1 %v2507_v44 }
 0x222   :  { %2241 = vmatprep.subr.bf16.mxu1 %v2409_v0 }
 0x225   :  { %2243 = vmatpush3.bf16.msra.mxu1 %v2518_v49 }
 0x226   :  { %2244 = vmatprep.subr.bf16.mxu1 %v2409_v0 }
 0x229   :  { %2246 = vmatpush3.bf16.msra.mxu1 %v2520_v50 }
 0x22a   :  { %2247 = vmatprep.subr.bf16.mxu1 %v2409_v0 }
 0x22d   :  { %2249 = vmatpush3.bf16.msra.mxu1 %v2522_v51 }
 0x22e   :  { %2250 = vmatprep.subr.bf16.mxu1 %v2409_v0 }
 0x230   :  { %1938 = vmatmul.mubr.f32.vlgmr.msra.gmra.mrb[0].mxu1 %v789_v63 }
 0x231   :  { %2252 = vmatpush3.bf16.msra.mxu1 %v2576_v27  ;;  %1972 = vmatprep.mubr.msk.f32.mxu1 %vm2410_vm0, %v2411_v1 }
 0x232   :  { %2253 = vmatprep.subr.bf16.mxu1 %v2409_v0 }
 0x235   :  { %2255 = vmatpush3.bf16.msra.mxu1 %v2578_v28 }
 0x236   :  { %2256 = vmatprep.subr.bf16.mxu1 %v2409_v0 }
 0x239   :  { %2258 = vmatpush3.bf16.msra.mxu1 %v2580_v29 }
 0x23a   :  { %2259 = vmatprep.subr.bf16.mxu1 %v2409_v0 }
 0x23d   :  { %2261 = vmatpush3.bf16.msra.mxu1 %v2583_v30 }
 0x23e   :  { %2262 = vmatprep.subr.bf16.mxu1 %v2409_v0 }
 0x241   :  { %2264 = vmatpush3.bf16.msra.mxu1 %v2585_v33 }
 0x242   :  { %2265 = vmatprep.subr.bf16.mxu1 %v2409_v0 }
 0x245   :  { %2267 = vmatpush3.bf16.msra.mxu1 %v2587_v36 }
 0x246   :  { %2268 = vmatprep.subr.bf16.mxu1 %v2409_v0 }
 0x249   :  { %2270 = vmatpush3.bf16.msra.mxu1 %v2589_v37 }
 0x24a   :  { %2271 = vmatprep.subr.bf16.mxu1 %v2409_v0 }
 0x24d   :  { %2273 = vmatpush3.bf16.msra.mxu1 %v2592_v38 }
 0x24e   :  { %2274 = vmatprep.subr.bf16.mxu1 %v2409_v0 }
 0x250   :  { %1973 = vmatmul.mubr.f32.vlgmr.msra.gmra.mrb[0].mxu1 %v2760_v61 }
 0x251   :  { %2276 = vmatpush3.bf16.msra.mxu1 %v2471_v12  ;;  %2007 = vmatprep.mubr.msk.f32.mxu1 %vm2410_vm0, %v2411_v1 }
 0x252   :  { %2277 = vmatprep.subr.bf16.mxu1 %v2409_v0 }
 0x255   :  { %2279 = vmatpush3.bf16.msra.mxu1 %v2474_v13 }
 0x256   :  { %2280 = vmatprep.subr.bf16.mxu1 %v2409_v0 }
 0x259   :  { %2282 = vmatpush3.bf16.msra.mxu1 %v2480_v18 }
 0x25a   :  { %2283 = vmatprep.subr.bf16.mxu1 %v2409_v0 }
 0x25d   :  { %2285 = vmatpush3.bf16.msra.mxu1 %v2491_v32  ;;  %v1385_v32 = vld [vmem:[%s2879_s2] ss:$0 sm:$0xff] }
 0x25e   :  { %2286 = vmatprep.subr.bf16.mxu1 %v2409_v0 }
 0x261   :  { %2288 = vmatpush3.bf16.msra.mxu1 %v2507_v44 }
 0x262   :  { %2289 = vmatprep.subr.bf16.mxu1 %v2409_v0 }
 0x265   :  { %2291 = vmatpush3.bf16.msra.mxu1 %v2518_v49 }
 0x266   :  { %2292 = vmatprep.subr.bf16.mxu1 %v2409_v0 }
 0x269   :  { %2294 = vmatpush3.bf16.msra.mxu1 %v2520_v50 }
 0x26a   :  { %2295 = vmatprep.subr.bf16.mxu1 %v2409_v0 }
 0x26d   :  { %2297 = vmatpush3.bf16.msra.mxu1 %v2522_v51 }
 0x270   :  { %2008 = vmatmul.mubr.f32.vlgmr.msra.gmra.mrb[0].mxu1 %v2760_v61 }
 0x343   :  { %v1343_v1 = vpop.f32.mrb[0].mxu1 }
 0x344   :  { %v2298_v12 = vadd.f32 1e-05, %v1343_v1  ;;  %v2009_v13 = vpop.f32.mrb[1].mxu1 }
 0x346   :  { %2329 = vrsqrt.f32 %v2298_v12 }
 0x350   :  { %v2330_v18 = vpop.eup %2329 }
 0x351   :  { %v1348_v31 = vmul.f32 %v2330_v18, %v2756_v52 }
 0x353   :  { %v1356_v0 = vmul.f32 %v1384_v22, %v1348_v31 }
 0x355   :  { %v1364_v44 = vadd.f32 %v1385_v32, %v1356_v0 }
 0x357   :  { %1365 = vst [vmem:[#allocation7] sm:$0xff] %v1364_v44 }
 0x358   :  { %1370 = vsyncadd [#allocation4], 64  ;;  %s2412_s20 = smov [#allocation7]  }
 0x359   :  { %s1371_s21 = sshll.u32 %s2412_s20, 4  ;;  %s1372_s21 = int_to_ptr.vmem [resolvable:$true] %s1371_s21 }
 0x35a   :  { %s2375_s22 = scalar_lea.vmem %s1372_s21, 64  ;;  %s2379_s23 = scalar_lea.vmem %s1372_s21, 128 }
 0x35b   :  { %p2376_p2 = scmp.ne.s32.totalorder %s1372_s21, %s2375_s22  ;;  %p2380_p3 = scmp.lt.s32.totalorder %s1372_s21, %s1372_s21 }
 0x35c   :  { %p2381_p4 = scmp.lt.s32.totalorder %s2379_s23, %s2375_s22 }
 0x35e   :  { %p2382_p5 = por %p2381_p4, %p2380_p3 }
 0x360   :  { %p2383_p6 = pnand %p2382_p5, %p2376_p2 }
 0x362   :  { %2386 = shalt.err (!%p2383_p6)
}
 0x363   :  { %s2387_s25 = scalar_lea.hbm %s2881_s4, 64 }
 0x364   :  { %p2388_p7 = scmp.ne.s32.totalorder %s2881_s4, %s2387_s25  ;;  %p2391_p8 = scmp.lt.u32.totalorder %s2387_s25, %s2881_s4 }
 0x366   :  { %p2393_p9 = pnand %p2391_p8, %p2388_p7 }
 0x368   :  { %2396 = shalt.err (!%p2393_p9)
}
 0x369   :  { %1377 = dma.vmem_to_hbm [thread:$0]  %s1372_s21, 64, %s2881_s4, [#allocation4], %s2404_s26, %s2404_s26, %s2405_s27  }
 0x36a   :  { %2401 = dma.done.wait [#allocation4], 128  }
 0x36b   :  { %2402 = vsyncadd [#allocation4], 4294967168 }
 0x36c   :  { %1381 = vsyncpa [#allocation3], 1 }
 0x36d   :  { %1382 = vsyncpa [#allocation6], 1 }
 0x36e   :  { %1383 = vsyncpa [#allocation4], 1 }

</bundles_post_ra>
